<compile_context>
chip_gen: v5e
topology: v5e:2x2
jax: 0.10.0
libtpu: 0.0.40
codegen_flags: <defaults>
</compile_context>

<pallas_src>
import math
from functools import partial

import jax
import jax.numpy as jnp
from jax import lax
from jax.experimental import pallas as pl
from jax.experimental.pallas import tpu as pltpu

_MB = 1024 * 1024


def _vmem_cap_bytes():
    """Physical VMEM per TensorCore; conservative fallback if query fails."""
    try:
        return int(pltpu.get_tpu_info().vmem_capacity_bytes)
    except Exception:  # pragma: no cover - older/newer jax or odd backends
        return 64 * _MB


def _pick_q_tile(l_q, h, l_k, budget):
    """Largest L_Q tile whose f32 score slab (H*TQ*L_K*4) fits `budget`.

    The metric output's last dim is L_Q, so a partial tile must be a multiple
    of 128 (lane constraint); otherwise fall back to the full extent.
    """
    def score_bytes(tq):
        return h * tq * l_k * 4

    if score_bytes(l_q) <= budget:
        return l_q
    for tq in (2048, 1024, 512, 256, 128):
        if l_q % tq == 0 and score_bytes(tq) <= budget:
            return tq
    return 128 if l_q % 128 == 0 else l_q


# ----------------------------- kernel 1 --------------------------------------
def _metric_kernel(inv_l_k, q_ref, k_ref, c_ref, m_ref):
    # q_ref: (1, H, TQ, D) bf16    k_ref: (1, H, L_K, D) bf16
    # c_ref: (TQ, L_K) f32 sample-count matrix (shared across batch & head)
    # m_ref: (1, H, TQ) f32 metric output
    q = q_ref[0]
    k = k_ref[0]
    c = c_ref[...]
    # bf16 operands on the MXU, f32 accumulation; sampled columns are selected
    # in-VMEM so the [B,H,L_Q,U_part,D] K_sample gather never exists in HBM.
    s = jnp.einsum("hqd,hkd->hqk", q, k,
                   preferred_element_type=jnp.float32)             # (H,TQ,L_K)
    sampled = (c > 0.0)[None]                                      # (1,TQ,L_K)
    max_term = jnp.max(jnp.where(sampled, s, -jnp.inf), axis=-1)   # (H,TQ)
    sum_term = jnp.sum(s * c[None], axis=-1) * inv_l_k             # (H,TQ)
    m_ref[0] = (max_term - sum_term).astype(m_ref.dtype)


def _sampled_metric(q_h, k_h, counts):
    """q_h/k_h: [B,H,L,D] bf16 head-major; counts: [L_Q,L_K] f32 -> [B,H,L_Q] f32."""
    B, H, L_Q, D = q_h.shape
    L_K = k_h.shape[2]
    cap = _vmem_cap_bytes()
    TQ = _pick_q_tile(L_Q, H, L_K, budget=cap // 8)
    n_tq = L_Q // TQ
    e = jnp.dtype(q_h.dtype).itemsize

    q_blk = H * TQ * D * e
    k_blk = H * L_K * D * e
    c_blk = TQ * L_K * 4
    o_blk = H * TQ * 4
    s_tmp = H * TQ * L_K * 4
    est = 2 * (q_blk + k_blk + c_blk + o_blk) + 3 * s_tmp + 2 * _MB
    vmem_limit = int(min(0.9 * cap, max(est + 16 * _MB, 64 * _MB)))

    cost = pl.CostEstimate(
        flops=2 * B * H * L_Q * L_K * D,
        transcendentals=0,
        bytes_accessed=int(q_h.size * e + B * k_blk + B * n_tq * c_blk
                           + B * H * L_Q * 4))

    return pl.pallas_call(
        partial(_metric_kernel, 1.0 / L_K),
        out_shape=jax.ShapeDtypeStruct((B, H, L_Q), jnp.float32),
        grid=(B, n_tq),                 # b outer -> K block stays resident per b
        in_specs=[
            pl.BlockSpec((1, H, TQ, D), lambda b, qi: (b, 0, qi, 0)),
            pl.BlockSpec((1, H, L_K, D), lambda b, qi: (b, 0, 0, 0)),
            pl.BlockSpec((TQ, L_K), lambda b, qi: (qi, 0)),
        ],
        out_specs=pl.BlockSpec((1, H, TQ), lambda b, qi: (b, 0, qi)),
        compiler_params=pltpu.CompilerParams(
            dimension_semantics=("parallel", "parallel"),
            vmem_limit_bytes=vmem_limit),
        cost_estimate=cost,
    )(q_h, k_h, counts)


# ----------------------------- kernel 2 --------------------------------------
def _sparse_attn_kernel(scale, q_ref, k_ref, v_ref, idx_ref, o_ref):
    # q_ref: (1,H,u_pad,D) f32   k_ref/v_ref: (1,H,L_K,D) bf16
    # idx_ref: (1,H,u_pad) int32  o_ref: (1,H,u_pad,D)
    q = q_ref[0]
    k = k_ref[0]
    v = v_ref[0]
    idx = idx_ref[0]
    L_K = k.shape[1]

    # Fold the softmax scale into the small (u, D) queries (cheaper than
    # scaling the (u, L_K) score matrix); bf16 operands, f32 accumulation.
    qs = (q.astype(jnp.float32) * scale).astype(k.dtype)
    scores = jnp.einsum("hud,hkd->huk", qs, k,
                        preferred_element_type=jnp.float32)        # (H,u,L_K)

    # ProbMask: mask[t, j] = (j > index[t]) -> -inf.  (1,1,L_K) iota broadcast.
    col = lax.broadcasted_iota(jnp.int32, (1, 1, L_K), 2)
    scores = jnp.where(col > idx[:, :, None], -jnp.inf, scores)

    # f32 softmax; normalize AFTER attn @ V so the division shrinks to a
    # (u, D) multiply by an EUP approximate reciprocal.
    m = jnp.max(scores, axis=-1, keepdims=True)
    p = jnp.exp(scores - m)
    row_sum = jnp.sum(p, axis=-1, keepdims=True)                   # (H,u,1)
    o = jnp.einsum("huk,hkd->hud", p.astype(v.dtype), v,
                   preferred_element_type=jnp.float32)             # (H,u,D)
    o_ref[0] = (o * pl.reciprocal(row_sum, approx=True)).astype(o_ref.dtype)


def _sparse_attention(q_r, k_h, v_h, idx, scale, out_dtype):
    B, H, u_pad, D = q_r.shape
    L_K = k_h.shape[2]
    cap = _vmem_cap_bytes()
    ek = jnp.dtype(k_h.dtype).itemsize
    eo = jnp.dtype(out_dtype).itemsize

    q_blk = H * u_pad * D * 4
    kv_blk = 2 * H * L_K * D * ek
    i_blk = H * u_pad * 4
    o_blk = H * u_pad * D * eo
    s_tmp = H * u_pad * L_K * 4
    est = 2 * (q_blk + kv_blk + i_blk + o_blk) + 3 * s_tmp + 2 * _MB
    vmem_limit = int(min(0.9 * cap, max(est + 16 * _MB, 64 * _MB)))

    cost = pl.CostEstimate(
        flops=4 * B * H * u_pad * L_K * D,
        transcendentals=B * H * u_pad * L_K,
        bytes_accessed=int(q_r.size * 4 + k_h.size * ek + v_h.size * ek
                           + idx.size * 4 + B * H * u_pad * D * eo))

    # TODO(synk): split H across a second "parallel" grid axis when B == 1 so
    # v7x's second TensorCore is not idle on single-batch inference.
    return pl.pallas_call(
        partial(_sparse_attn_kernel, scale),
        out_shape=jax.ShapeDtypeStruct((B, H, u_pad, D), out_dtype),
        grid=(B,),
        in_specs=[
            pl.BlockSpec((1, H, u_pad, D), lambda b: (b, 0, 0, 0)),
            pl.BlockSpec((1, H, L_K, D), lambda b: (b, 0, 0, 0)),
            pl.BlockSpec((1, H, L_K, D), lambda b: (b, 0, 0, 0)),
            pl.BlockSpec((1, H, u_pad), lambda b: (b, 0, 0)),
        ],
        out_specs=pl.BlockSpec((1, H, u_pad, D), lambda b: (b, 0, 0, 0)),
        compiler_params=pltpu.CompilerParams(
            dimension_semantics=("parallel",),
            vmem_limit_bytes=vmem_limit),
        cost_estimate=cost,
    )(q_r, k_h, v_h, idx)


# ----------------------------- public wrapper --------------------------------
@partial(jax.jit, static_argnames=("factor", "scale"))
def prob_attention(queries, keys, values, mask=None, *, factor=5, scale=None,
                   sample_key=None):
    """ProbAttention.forward (mask_flag=True, output_attention=False).

    queries/keys/values: [B, L, H, D] (PyTorch layout). Returns (context, None).
    """
    del mask  # attn_mask is unused on the torch mask_flag=True forward path
    B, L_Q, H, D = queries.shape
    _, L_K, _, _ = keys.shape
    assert L_Q == L_K, "mask_flag=True path requires L_Q == L_K (cumsum init)"

    # Single fused transpose+cast repacks (head-major bf16) feeding the MXU
    # kernels. The f32 originals stay in native [B,L,H,D] layout for the
    # gather / cumsum / scatter epilogue, so no transpose-back is needed.
    q_h = jnp.transpose(queries, (0, 2, 1, 3)).astype(jnp.bfloat16)
    k_h = jnp.transpose(keys, (0, 2, 1, 3)).astype(jnp.bfloat16)
    v_h = jnp.transpose(values, (0, 2, 1, 3)).astype(jnp.bfloat16)

    U_part = min(int(factor * math.ceil(math.log(L_K))), L_K)
    u = min(int(factor * math.ceil(math.log(L_Q))), L_Q)

    # torch.randint(L_K, (L_Q, sample_k)) -- deterministic JAX equivalent.
    if sample_key is None:
        sample_key = jax.random.PRNGKey(42)
    index_sample = jax.random.randint(sample_key, (L_Q, U_part), 0, L_K)
    # Per-(query row, key) sample multiplicity; shared by every (batch, head).
    counts = jnp.zeros((L_Q, L_K), jnp.float32).at[
        jnp.arange(L_Q)[:, None], index_sample].add(1.0)

    # kernel 1: sparsity metric (bf16 MXU, f32 accumulation).
    M = _sampled_metric(q_h, k_h, counts)                          # [B,H,L_Q]

    # top-u "active" queries (torch .topk(sorted=False): order-insensitive).
    _, M_top = lax.top_k(M, u)                                     # [B,H,u]

    # Gather the active queries from the native-layout input (small tensor).
    idx_blh = jnp.transpose(M_top, (0, 2, 1))                      # [B,u,H]
    Q_reduce = jnp.take_along_axis(queries, idx_blh[..., None], axis=1)
    Q_reduce = jnp.transpose(Q_reduce, (0, 2, 1, 3)).astype(jnp.float32)

    scale_val = float(scale) if scale is not None else 1.0 / math.sqrt(D)

    # Pad u to a sublane-friendly multiple; padded rows carry index 0 (always
    # at least one unmasked column -> no NaN) and are sliced off afterwards.
    u_pad = ((u + 7) // 8) * 8
    pad = u_pad - u
    q_r = jnp.pad(Q_reduce, ((0, 0), (0, 0), (0, pad), (0, 0)))
    idx_p = jnp.pad(M_top.astype(jnp.int32), ((0, 0), (0, 0), (0, pad)))

    # kernel 2: scores + ProbMask + softmax + attn @ V (bf16 operands on MXU).
    out_top = _sparse_attention(q_r, k_h, v_h, idx_p, scale_val,
                                values.dtype)                      # [B,H,u_pad,D]
    out_top = out_top[:, :, :u]

    # initial context (mask_flag=True): cumsum of V over the sequence axis in
    # the NATIVE layout, then scatter the attended rows -> already [B,L,H,D].
    # TODO(synk): fuse this scatter into kernel 2 (input_output_aliases +
    # scalar-prefetched M_top) to save one full HBM pass over the context.
    context = jnp.cumsum(values, axis=1)                           # [B,L,H,D]
    b_idx = jnp.arange(B)[:, None, None]
    h_idx = jnp.arange(H)[None, :, None]
    context = context.at[b_idx, M_top, h_idx].set(
        out_top.astype(context.dtype))
    # nn.Dropout is constructed in torch __init__ but never applied in forward.
    return context, None                                           # attn=None


# ----------------------------- pure-JAX reference ----------------------------
def _reference(queries, keys, values, index_sample, factor=5, scale=None,
               m_top=None):
    # Mirrors the torch code (mask_flag=True) in f32.
    B, L_Q, H, D = queries.shape
    _, L_K, _, _ = keys.shape
    Q = jnp.transpose(queries, (0, 2, 1, 3))
    K = jnp.transpose(keys, (0, 2, 1, 3))
    V = jnp.transpose(values, (0, 2, 1, 3))
    u = min(int(factor * math.ceil(math.log(L_Q))), L_Q)

    if m_top is None:
        K_sample = jnp.take(K, index_sample, axis=2)
        QK_sample = jnp.einsum("bhqd,bhqsd->bhqs", Q, K_sample,
                               precision="highest")
        M = QK_sample.max(-1) - QK_sample.sum(-1) / L_K
        _, m_top = lax.top_k(M, u)
    Q_reduce = jnp.take_along_axis(Q, m_top[..., None], axis=2)
    scores = jnp.einsum("bhud,bhkd->bhuk", Q_reduce, K, precision="highest")
    sc = scale if scale is not None else 1.0 / math.sqrt(D)
    scores = scores * sc
    col = jnp.arange(L_K)[None, None, None, :]
    scores = jnp.where(col > m_top[..., None], -jnp.inf, scores)
    attn = jax.nn.softmax(scores, axis=-1)
    out_top = jnp.einsum("bhuk,bhkd->bhud", attn, V, precision="highest")
    context = jnp.cumsum(V, axis=2)
    b_idx = jnp.arange(B)[:, None, None]
    h_idx = jnp.arange(H)[None, :, None]
    context = context.at[b_idx, h_idx, m_top].set(out_top)
    return jnp.transpose(context, (0, 2, 1, 3))


if __name__ == "__main__":
    key = jax.random.PRNGKey(0)
    kq, kk, kv, ks = jax.random.split(key, 4)
    B, L, H, D = 2, 16, 4, 32          # L_Q = L_K (mask_flag path needs equal)
    queries = jax.random.normal(kq, (B, L, H, D), jnp.float32)
    keys = jax.random.normal(kk, (B, L, H, D), jnp.float32)
    values = jax.random.normal(kv, (B, L, H, D), jnp.float32)

    context, attn = prob_attention(queries, keys, values, sample_key=ks)
    context = jax.block_until_ready(context)
    assert context.shape == (B, L, H, D) and attn is None

    # --- correctness checks vs. pure-JAX reference (same sampling indices) ---
    factor = 5
    U_part = min(int(factor * math.ceil(math.log(L))), L)
    u = min(int(factor * math.ceil(math.log(L))), L)
    idx_sample = jax.random.randint(ks, (L, U_part), 0, L)

    # 1) kernel-1 sparsity metric matches the gather-based torch formulation
    #    (bf16 operands: the metric only drives the top-k ordering).
    Qb = jnp.transpose(queries, (0, 2, 1, 3))
    Kb = jnp.transpose(keys, (0, 2, 1, 3))
    counts = jnp.zeros((L, L), jnp.float32).at[
        jnp.arange(L)[:, None], idx_sample].add(1.0)
    M_kernel = jax.block_until_ready(
        _sampled_metric(Qb.astype(jnp.bfloat16), Kb.astype(jnp.bfloat16),
                        counts))
    K_sample = jnp.take(Kb, idx_sample, axis=2)
    QK_sample = jnp.einsum("bhqd,bhqsd->bhqs", Qb, K_sample, precision="highest")
    M_ref = QK_sample.max(-1) - QK_sample.sum(-1) / L
    assert jnp.allclose(M_kernel, M_ref, atol=5e-1, rtol=5e-2), (
        float(jnp.max(jnp.abs(M_kernel - M_ref))))

    # 2) end-to-end context; the reference is pinned to the kernel's top-k
    #    indices so the check is robust to near-ties in the bf16 metric.
    _, m_top = lax.top_k(M_kernel, u)
    ref = _reference(queries, keys, values, idx_sample, m_top=m_top)
    max_err = float(jnp.max(jnp.abs(context - ref)))
    rel_err = float(jnp.linalg.norm(context - ref) / jnp.linalg.norm(ref))
    assert jnp.allclose(context, ref, atol=1e-1, rtol=7e-2), max_err
    assert rel_err < 3e-2, rel_err

    print("KERNEL_OK")
</pallas_src>

<mosaic_0001>
module attributes {stable_mosaic.version = 11 : i64} {
  func.func @_metric_kernel(%arg0: i32, %arg1: i32, %arg2: memref<1x4x16x32xbf16, #tpu.memory_space<vmem>>, %arg3: memref<1x4x16x32xbf16, #tpu.memory_space<vmem>>, %arg4: memref<16x16xf32, #tpu.memory_space<vmem>>, %arg5: memref<1x4x16xf32, #tpu.memory_space<vmem>>) attributes {dimension_semantics = [#tpu.dimension_semantics<parallel>, #tpu.dimension_semantics<parallel>], iteration_bounds = array<i64: 2, 1>, scalar_prefetch = 0 : i64, scratch_operands = 0 : i64, tpu.core_type = #tpu.core_type<tc>, window_params = [{transform_indices = @transform_0, window_bounds = array<i64: 1, 4, 16, 32>}, {transform_indices = @transform_1, window_bounds = array<i64: 1, 4, 16, 32>}, {transform_indices = @transform_2, window_bounds = array<i64: 16, 16>}, {transform_indices = @transform_3, window_bounds = array<i64: 1, 4, 16>}]} {
    %c0 = arith.constant 0 : index
    %c0_0 = arith.constant 0 : index
    %c0_1 = arith.constant 0 : index
    %c0_2 = arith.constant 0 : index
    %0 = vector.load %arg2[%c0, %c0_0, %c0_1, %c0_2] : memref<1x4x16x32xbf16, #tpu.memory_space<vmem>>, vector<1x4x16x32xbf16>
    %1 = vector.shape_cast %0 : vector<1x4x16x32xbf16> to vector<4x16x32xbf16>
    %c0_3 = arith.constant 0 : index
    %c0_4 = arith.constant 0 : index
    %c0_5 = arith.constant 0 : index
    %c0_6 = arith.constant 0 : index
    %2 = vector.load %arg3[%c0_3, %c0_4, %c0_5, %c0_6] : memref<1x4x16x32xbf16, #tpu.memory_space<vmem>>, vector<1x4x16x32xbf16>
    %3 = vector.shape_cast %2 : vector<1x4x16x32xbf16> to vector<4x16x32xbf16>
    %c0_7 = arith.constant 0 : index
    %c0_8 = arith.constant 0 : index
    %4 = vector.load %arg4[%c0_7, %c0_8] : memref<16x16xf32, #tpu.memory_space<vmem>>, vector<16x16xf32>
    "tpu.trace_start"() <{level = 10 : i32, message = "hqd,hkd->hqk"}> : () -> ()
    %cst = arith.constant dense<0.000000e+00> : vector<4x16x16xf32>
    %5 = tpu.matmul %1, %3, %cst {dimension_numbers = #tpu.dot_dimension_numbers<[2], [2], [1], [1], [0, 0, 0, 1, 1, 1], [0], [0]>} : vector<4x16x32xbf16>, vector<4x16x32xbf16>, vector<4x16x16xf32> -> vector<4x16x16xf32>
    %cst_9 = arith.constant 0.000000e+00 : f32
    "tpu.trace_stop"() : () -> ()
    %6 = vector.broadcast %cst_9 : f32 to vector<16x16xf32>
    %7 = arith.cmpf ogt, %4, %6 : vector<16x16xf32>
    %8 = vector.shape_cast %7 : vector<16x16xi1> to vector<1x16x16xi1>
    %cst_10 = arith.constant 0xFF800000 : f32
    %9 = vector.shape_cast %8 : vector<1x16x16xi1> to vector<1x16x16xi1>
    %10 = vector.broadcast %9 : vector<1x16x16xi1> to vector<4x16x16xi1>
    %11 = vector.broadcast %cst_10 : f32 to vector<4x16x16xf32>
    %12 = arith.select %10, %5, %11 : vector<4x16x16xi1>, vector<4x16x16xf32>
    %cst_11 = arith.constant dense<0xFF800000> : vector<4x16xf32>
    %13 = vector.multi_reduction <maximumf>, %12, %cst_11 [2] : vector<4x16x16xf32> to vector<4x16xf32>
    %14 = vector.shape_cast %4 : vector<16x16xf32> to vector<1x16x16xf32>
    %15 = vector.broadcast %14 : vector<1x16x16xf32> to vector<4x16x16xf32>
    %16 = arith.mulf %5, %15 : vector<4x16x16xf32>
    %cst_12 = arith.constant dense<0.000000e+00> : vector<4x16xf32>
    %17 = vector.multi_reduction <add>, %16, %cst_12 [2] : vector<4x16x16xf32> to vector<4x16xf32>
    %cst_13 = arith.constant 6.250000e-02 : f32
    %18 = vector.broadcast %cst_13 : f32 to vector<4x16xf32>
    %19 = arith.mulf %17, %18 : vector<4x16xf32>
    %20 = arith.subf %13, %19 : vector<4x16xf32>
    %c0_14 = arith.constant 0 : index
    %c0_15 = arith.constant 0 : index
    %c0_16 = arith.constant 0 : index
    %21 = vector.load %arg5[%c0_14, %c0_15, %c0_16] : memref<1x4x16xf32, #tpu.memory_space<vmem>>, vector<1x4x16xf32>
    %22 = vector.shape_cast %21 : vector<1x4x16xf32> to vector<4x16xf32>
    %23 = vector.shape_cast %20 : vector<4x16xf32> to vector<1x4x16xf32>
    tpu.vector_store %arg5[%c0_14, %c0_15, %c0_16], %23 {strides = array<i32>} : memref<1x4x16xf32, #tpu.memory_space<vmem>>, vector<1x4x16xf32>,
    return
  }
  func.func @transform_0(%arg0: i32, %arg1: i32) -> (i32, i32, i32, i32) {
    %c0_i32 = arith.constant 0 : i32
    %c0_i32_0 = arith.constant 0 : i32
    %c0_i32_1 = arith.constant 0 : i32
    return %arg0, %c0_i32, %arg1, %c0_i32_0 : i32, i32, i32, i32
  }
  func.func @transform_1(%arg0: i32, %arg1: i32) -> (i32, i32, i32, i32) {
    %c0_i32 = arith.constant 0 : i32
    %c0_i32_0 = arith.constant 0 : i32
    %c0_i32_1 = arith.constant 0 : i32
    %c0_i32_2 = arith.constant 0 : i32
    return %arg0, %c0_i32, %c0_i32_0, %c0_i32_1 : i32, i32, i32, i32
  }
  func.func @transform_2(%arg0: i32, %arg1: i32) -> (i32, i32) {
    %c0_i32 = arith.constant 0 : i32
    %c0_i32_0 = arith.constant 0 : i32
    return %arg1, %c0_i32 : i32, i32
  }
  func.func @transform_3(%arg0: i32, %arg1: i32) -> (i32, i32, i32) {
    %c0_i32 = arith.constant 0 : i32
    %c0_i32_0 = arith.constant 0 : i32
    return %arg0, %c0_i32, %arg1 : i32, i32, i32
  }
}

module attributes {stable_mosaic.version = 11 : i64} {
  func.func @_sparse_attn_kernel(%arg0: i32, %arg1: memref<1x4x16x32xf32, #tpu.memory_space<vmem>>, %arg2: memref<1x4x16x32xbf16, #tpu.memory_space<vmem>>, %arg3: memref<1x4x16x32xbf16, #tpu.memory_space<vmem>>, %arg4: memref<1x4x16xi32, #tpu.memory_space<vmem>>, %arg5: memref<1x4x16x32xf32, #tpu.memory_space<vmem>>) attributes {dimension_semantics = [#tpu.dimension_semantics<parallel>], iteration_bounds = array<i64: 2>, scalar_prefetch = 0 : i64, scratch_operands = 0 : i64, tpu.core_type = #tpu.core_type<tc>, window_params = [{transform_indices = @transform_0, window_bounds = array<i64: 1, 4, 16, 32>}, {transform_indices = @transform_1, window_bounds = array<i64: 1, 4, 16, 32>}, {transform_indices = @transform_2, window_bounds = array<i64: 1, 4, 16, 32>}, {transform_indices = @transform_3, window_bounds = array<i64: 1, 4, 16>}, {transform_indices = @transform_4, window_bounds = array<i64: 1, 4, 16, 32>}]} {
    %c0 = arith.constant 0 : index
    %c0_0 = arith.constant 0 : index
    %c0_1 = arith.constant 0 : index
    %c0_2 = arith.constant 0 : index
    %0 = vector.load %arg1[%c0, %c0_0, %c0_1, %c0_2] : memref<1x4x16x32xf32, #tpu.memory_space<vmem>>, vector<1x4x16x32xf32>
    %1 = vector.shape_cast %0 : vector<1x4x16x32xf32> to vector<4x16x32xf32>
    %c0_3 = arith.constant 0 : index
    %c0_4 = arith.constant 0 : index
    %c0_5 = arith.constant 0 : index
    %c0_6 = arith.constant 0 : index
    %2 = vector.load %arg2[%c0_3, %c0_4, %c0_5, %c0_6] : memref<1x4x16x32xbf16, #tpu.memory_space<vmem>>, vector<1x4x16x32xbf16>
    %3 = vector.shape_cast %2 : vector<1x4x16x32xbf16> to vector<4x16x32xbf16>
    %c0_7 = arith.constant 0 : index
    %c0_8 = arith.constant 0 : index
    %c0_9 = arith.constant 0 : index
    %c0_10 = arith.constant 0 : index
    %4 = vector.load %arg3[%c0_7, %c0_8, %c0_9, %c0_10] : memref<1x4x16x32xbf16, #tpu.memory_space<vmem>>, vector<1x4x16x32xbf16>
    %5 = vector.shape_cast %4 : vector<1x4x16x32xbf16> to vector<4x16x32xbf16>
    %c0_11 = arith.constant 0 : index
    %c0_12 = arith.constant 0 : index
    %c0_13 = arith.constant 0 : index
    %6 = vector.load %arg4[%c0_11, %c0_12, %c0_13] : memref<1x4x16xi32, #tpu.memory_space<vmem>>, vector<1x4x16xi32>
    %7 = vector.shape_cast %6 : vector<1x4x16xi32> to vector<4x16xi32>
    %cst = arith.constant 0.176776692 : f32
    %8 = vector.broadcast %cst : f32 to vector<4x16x32xf32>
    %9 = arith.mulf %1, %8 : vector<4x16x32xf32>
    %10 = arith.truncf %9 : vector<4x16x32xf32> to vector<4x16x32xbf16>
    "tpu.trace_start"() <{level = 10 : i32, message = "hud,hkd->huk"}> : () -> ()
    %cst_14 = arith.constant dense<0.000000e+00> : vector<4x16x16xf32>
    %11 = tpu.matmul %10, %3, %cst_14 {dimension_numbers = #tpu.dot_dimension_numbers<[2], [2], [1], [1], [0, 0, 0, 1, 1, 1], [0], [0]>} : vector<4x16x32xbf16>, vector<4x16x32xbf16>, vector<4x16x16xf32> -> vector<4x16x16xf32>
    "tpu.trace_stop"() : () -> ()
    %12 = tpu.iota {dimensions = array<i32: 2>} : vector<1x1x16xi32>
    %13 = vector.shape_cast %7 : vector<4x16xi32> to vector<4x16x1xi32>
    %14 = vector.broadcast %12 : vector<1x1x16xi32> to vector<4x16x16xi32>
    %15 = vector.broadcast %13 : vector<4x16x1xi32> to vector<4x16x16xi32>
    %16 = arith.cmpi sgt, %14, %15 : vector<4x16x16xi32>
    %cst_15 = arith.constant 0xFF800000 : f32
    %17 = vector.broadcast %cst_15 : f32 to vector<4x16x16xf32>
    %18 = arith.select %16, %17, %11 : vector<4x16x16xi1>, vector<4x16x16xf32>
    %cst_16 = arith.constant dense<0xFF800000> : vector<4x16xf32>
    %19 = vector.multi_reduction <maximumf>, %18, %cst_16 [2] : vector<4x16x16xf32> to vector<4x16xf32>
    %20 = vector.shape_cast %19 : vector<4x16xf32> to vector<4x16x1xf32>
    %21 = vector.broadcast %20 : vector<4x16x1xf32> to vector<4x16x16xf32>
    %22 = arith.subf %18, %21 : vector<4x16x16xf32>
    %23 = math.exp %22 : vector<4x16x16xf32>
    %cst_17 = arith.constant dense<0.000000e+00> : vector<4x16xf32>
    %24 = vector.multi_reduction <add>, %23, %cst_17 [2] : vector<4x16x16xf32> to vector<4x16xf32>
    %25 = vector.shape_cast %24 : vector<4x16xf32> to vector<4x16x1xf32>
    %26 = arith.truncf %23 : vector<4x16x16xf32> to vector<4x16x16xbf16>
    "tpu.trace_start"() <{level = 10 : i32, message = "huk,hkd->hud"}> : () -> ()
    %cst_18 = arith.constant dense<0.000000e+00> : vector<4x16x32xf32>
    %27 = tpu.matmul %26, %5, %cst_18 {dimension_numbers = #tpu.dot_dimension_numbers<[2], [1], [1], [2], [0, 0, 0, 1, 1, 2], [0], [0]>} : vector<4x16x16xbf16>, vector<4x16x32xbf16>, vector<4x16x32xf32> -> vector<4x16x32xf32>
    "tpu.trace_stop"() : () -> ()
    %28 = tpu.reciprocal %25 {approx = true} : vector<4x16x1xf32> -> vector<4x16x1xf32>
    %29 = vector.broadcast %28 : vector<4x16x1xf32> to vector<4x16x32xf32>
    %30 = arith.mulf %27, %29 : vector<4x16x32xf32>
    %c0_19 = arith.constant 0 : index
    %c0_20 = arith.constant 0 : index
    %c0_21 = arith.constant 0 : index
    %c0_22 = arith.constant 0 : index
    %31 = vector.load %arg5[%c0_19, %c0_20, %c0_21, %c0_22] : memref<1x4x16x32xf32, #tpu.memory_space<vmem>>, vector<1x4x16x32xf32>
    %32 = vector.shape_cast %31 : vector<1x4x16x32xf32> to vector<4x16x32xf32>
    %33 = vector.shape_cast %30 : vector<4x16x32xf32> to vector<1x4x16x32xf32>
    tpu.vector_store %arg5[%c0_19, %c0_20, %c0_21, %c0_22], %33 {strides = array<i32>} : memref<1x4x16x32xf32, #tpu.memory_space<vmem>>, vector<1x4x16x32xf32>,
    return
  }
  func.func @transform_0(%arg0: i32) -> (i32, i32, i32, i32) {
    %c0_i32 = arith.constant 0 : i32
    %c0_i32_0 = arith.constant 0 : i32
    %c0_i32_1 = arith.constant 0 : i32
    %c0_i32_2 = arith.constant 0 : i32
    return %arg0, %c0_i32, %c0_i32_0, %c0_i32_1 : i32, i32, i32, i32
  }
  func.func @transform_1(%arg0: i32) -> (i32, i32, i32, i32) {
    %c0_i32 = arith.constant 0 : i32
    %c0_i32_0 = arith.constant 0 : i32
    %c0_i32_1 = arith.constant 0 : i32
    %c0_i32_2 = arith.constant 0 : i32
    return %arg0, %c0_i32, %c0_i32_0, %c0_i32_1 : i32, i32, i32, i32
  }
  func.func @transform_2(%arg0: i32) -> (i32, i32, i32, i32) {
    %c0_i32 = arith.constant 0 : i32
    %c0_i32_0 = arith.constant 0 : i32
    %c0_i32_1 = arith.constant 0 : i32
    %c0_i32_2 = arith.constant 0 : i32
    return %arg0, %c0_i32, %c0_i32_0, %c0_i32_1 : i32, i32, i32, i32
  }
  func.func @transform_3(%arg0: i32) -> (i32, i32, i32) {
    %c0_i32 = arith.constant 0 : i32
    %c0_i32_0 = arith.constant 0 : i32
    %c0_i32_1 = arith.constant 0 : i32
    return %arg0, %c0_i32, %c0_i32_0 : i32, i32, i32
  }
  func.func @transform_4(%arg0: i32) -> (i32, i32, i32, i32) {
    %c0_i32 = arith.constant 0 : i32
    %c0_i32_0 = arith.constant 0 : i32
    %c0_i32_1 = arith.constant 0 : i32
    %c0_i32_2 = arith.constant 0 : i32
    return %arg0, %c0_i32, %c0_i32_0, %c0_i32_1 : i32, i32, i32, i32
  }
}

</mosaic_0001>

<bundles_post_ra>
// kernel: prob_attention.2
= control target key start
LH: loop header
LB: loop body
LE: loop exit
PB: predicated region body
PF: predicated region fallthrough
CT: control target
= control target key end

     0   :  { %s739_s12 = smov 0   ;;  %s741_s13 = smov 0   ;;  %s821_s0 = inlined_call_operand.vmem [shape: bf16[2,4,16,32], index: 0, kind: input, shape index: {}]   ;;  %s822_s1 = inlined_call_operand.vmem [shape: bf16[2,4,16,32], index: 1, kind: input, shape index: {}]   ;;  %s823_s2 = inlined_call_operand.vmem [shape: f32[16,16], index: 2, kind: input, shape index: {}]   ;;  %s824_s3 = inlined_call_operand.vmem [shape: f32[2,4,16], index: 3, kind: output, shape index: {}]  }
   0x1   :  { %s743_s14 = smov 0  }
   0x2 LB: > { %s25_s15 = sadd.s32 1, %s713_s13  ;;  %p617_p0 = scmp.ge.s32.totalorder %s717_s14, 1  ;;  %s717_s14 = sphi %s743_s14, %s13_s14   ;;  %s713_s13 = sphi %s741_s13, %s826_s13   ;;  %s709_s12 = sphi %s739_s12, %s825_s12  }
   0x3   : > { %p27_p1 = scmp.ge.s32.totalorder %s25_s15, 2  ;;  %p179_p2 = scmp.lt.s32.totalorder %s717_s14, 3 }
   0x5   : > { %s828_s15 = smov (%p27_p1, %s25_s15), 0  ;;  %p180_p3 = pnand %p617_p0, %p179_p2 }
   0x6   : > { %p220_p4 = scmp.lt.s32.totalorder (!%p180_p3), %s709_s12, 1 }
   0x7   : > { %183 = sbr.rel (%p180_p3) target bundleno = 315 (0x13b), region = 32 }
   0xc   : > { %s830_s12 = smov (!%p220_p4, %s709_s12), 1  ;;  %vm276_vm0 = vcmask 261120   ;;  %v264_v12 = vld [vmem:[%s823_s2] sm:$0xff]  ;;  %vm401_vm2 = vcmask 130048   ;;  %v265_v26 = vld [vmem:[%s823_s2 + $0x8] sm:$0xff]  ;;  %vm487_vm4 = vcmask 130112  }
   0xd   : > { %s661_s16 = sshll.u32 %s830_s12, 5  ;;  %vm387_vm1 = vcmp.gt.f32.partialorder %v264_v12, 0.0  ;;  %vm388_vm3 = vcmp.gt.f32.partialorder %v265_v26, 0.0  ;;  %vm498_vm5 = vcmask 1041409   ;;  %s622_s27 = sshll.u32 %s830_s12, 2  ;;  %vm500_vm6 = vcmask 1042434  }
   0xe   : > { %s233_s19 = scalar_lea.vmem %s822_s1, %s661_s16  ;;  %s227_s22 = scalar_lea.vmem %s821_s0, %s661_s16  ;;  %vm502_vm7 = vcmask 1043459   ;;  %vm505_vm8 = vcmask 125952  }
   0xf   : > { %v667_v0 = vld [vmem:[%s233_s19] sm:$0xff]  ;;  %v668_v1 = vld [vmem:[%s233_s19 + $0x8] sm:$0xff]  ;;  %v670_v2 = vld [vmem:[%s233_s19 + $0x18] sm:$0xff]  ;;  %s246_s30 = scalar_lea.vmem %s824_s3, %s622_s27 }
  0x10   : > { %v669_v3 = vld [vmem:[%s233_s19 + $0x10] sm:$0xff]  ;;  %v281_v4 = vsel %vm276_vm0, %v667_v0, 0  ;;  %v311_v5 = vsel %vm276_vm0, %v668_v1, 0  ;;  %v371_v6 = vsel %vm276_vm0, %v670_v2, 0  ;;  %v663_v8 = vld [vmem:[%s227_s22] sm:$0xff]  ;;  %v664_v9 = vld [vmem:[%s227_s22 + $0x8] sm:$0xff]  ;;  %v482_v2 = vlaneseq }
  0x11   : > { %290 = vmatpush.bf16.xpose.msra.mxu0 %v281_v4  ;;  %320 = vmatpush.bf16.xpose.msra.mxu1 %v311_v5  ;;  %v341_v7 = vsel %vm276_vm0, %v669_v3, 0  ;;  %v666_v10 = vld [vmem:[%s227_s22 + $0x18] sm:$0xff]  ;;  %v665_v11 = vld [vmem:[%s227_s22 + $0x10] sm:$0xff] }
  0x12   : > { %380 = vmatpush.bf16.xpose.msra.mxu3 %v371_v6  ;;  %350 = vmatpush.bf16.xpose.msra.mxu2 %v341_v7  ;;  %v483_v5 = vand.u32 127, %v482_v2 }
  0x18   : > { %631 = vmatmul.msk.bf16.vlgmr.msra.gmra.mxu0 %vm276_vm0, %v663_v8  ;;  %640 = vmatmul.msk.bf16.vlgmr.msra.gmra.mxu1 %vm276_vm0, %v664_v9  ;;  %v485_v9 = vadd.s32 4294967288, %v483_v5 }
  0x19   : > { %658 = vmatmul.msk.bf16.vlgmr.msra.gmra.mxu3 %vm276_vm0, %v666_v10  ;;  %649 = vmatmul.msk.bf16.vlgmr.msra.gmra.mxu2 %vm276_vm0, %v665_v11 }
  0x95   : > { %v292_v13 = vpop.f32.mrf.mxu0  ;;  %v322_v14 = vpop.f32.mrf.mxu1 }
  0x96   : > { %v395_v15 = vsel %vm387_vm1, %v322_v14, -inf  ;;  %v393_v16 = vsel %vm387_vm1, %v292_v13, -inf  ;;  %v428_v17 = vmul.f32 %v322_v14, %v264_v12  ;;  %v426_v21 = vmul.f32 %v292_v13, %v264_v12 }
  0x97   : > { %v408_v18 = vsel %vm401_vm2, %v395_v15, -inf  ;;  %v402_v19 = vsel %vm401_vm2, %v393_v16, -inf }
  0x98   : > { %409 = vmax.xlane.f32.xlu2 %v408_v18  ;;  %403 = vmax.xlane.f32.xlu0 %v402_v19  ;;  %v440_v20 = vsel %vm401_vm2, %v428_v17, 0.0  ;;  %v434_v28 = vsel %vm401_vm2, %v426_v21, 0.0 }
  0x99   : > { %441 = vadd.xlane.f32.xlu1 %v440_v20 }
  0x9c   : > { %v382_v22 = vpop.f32.mrf.mxu3  ;;  %v352_v23 = vpop.f32.mrf.mxu2 }
  0x9d   : > { %v432_v24 = vmul.f32 %v382_v22, %v264_v12  ;;  %v430_v25 = vmul.f32 %v352_v23, %v264_v12  ;;  %v294_v30 = vpop.f32.mrf.mxu0  ;;  %v397_v31 = vsel %vm387_vm1, %v352_v23, -inf  ;;  %v324_v39 = vpop.f32.mrf.mxu1  ;;  %v399_v47 = vsel %vm387_vm1, %v382_v22, -inf }
  0x9e   : > { %v394_v33 = vsel %vm388_vm3, %v294_v30, -inf  ;;  %v414_v35 = vsel %vm401_vm2, %v397_v31, -inf  ;;  %v396_v41 = vsel %vm388_vm3, %v324_v39, -inf  ;;  %v429_v42 = vmul.f32 %v324_v39, %v265_v26 }
  0x9f   : > { %v446_v27 = vsel %vm401_vm2, %v430_v25, 0.0  ;;  %v452_v29 = vsel %vm401_vm2, %v432_v24, 0.0  ;;  %v405_v38 = vsel %vm401_vm2, %v394_v33, -inf  ;;  %v411_v44 = vsel %vm401_vm2, %v396_v41, -inf }
  0xa0   : > { %447 = vadd.xlane.f32.xlu2 %v446_v27  ;;  %435 = vadd.xlane.f32.xlu0 %v434_v28  ;;  %v443_v45 = vsel %vm401_vm2, %v429_v42, 0.0  ;;  %v427_v46 = vmul.f32 %v294_v30, %v265_v26  ;;  %v420_v49 = vsel %vm401_vm2, %v399_v47, -inf }
  0xa1   : > { %453 = vadd.xlane.f32.xlu1 %v452_v29 }
  0xa2   : > { %v437_v50 = vsel %vm401_vm2, %v427_v46, 0.0 }
  0xa4   : > { %v354_v32 = vpop.f32.mrf.mxu2  ;;  %v384_v37 = vpop.f32.mrf.mxu3 }
  0xa5   : > { %v431_v34 = vmul.f32 %v354_v32, %v265_v26  ;;  %v433_v40 = vmul.f32 %v384_v37, %v265_v26  ;;  %v398_v48 = vsel %vm388_vm3, %v354_v32, -inf  ;;  %v400_v52 = vsel %vm388_vm3, %v384_v37, -inf }
  0xa6   : > { %v417_v51 = vsel %vm401_vm2, %v398_v48, -inf  ;;  %v423_v53 = vsel %vm401_vm2, %v400_v52, -inf }
  0xa7   : > { %v449_v36 = vsel %vm401_vm2, %v431_v34, 0.0  ;;  %v455_v43 = vsel %vm401_vm2, %v433_v40, 0.0 }
  0xa8   : > { %450 = vadd.xlane.f32.xlu2 %v449_v36  ;;  %415 = vmax.xlane.f32.xlu0 %v414_v35 }
  0xa9   : > { %406 = vmax.xlane.f32.xlu1 %v405_v38 }
  0xb0   : > { %456 = vadd.xlane.f32.xlu2 %v455_v43  ;;  %412 = vmax.xlane.f32.xlu0 %v411_v44 }
  0xb1   : > { %444 = vadd.xlane.f32.xlu1 %v443_v45 }
  0xb8   : > { %421 = vmax.xlane.f32.xlu2 %v420_v49  ;;  %438 = vadd.xlane.f32.xlu0 %v437_v50 }
  0xb9   : > { %418 = vmax.xlane.f32.xlu1 %v417_v51 }
  0xc0   : > { %424 = vmax.xlane.f32.xlu0 %v423_v53 }
 0x10b   : > { %v410_v54 = vpop.xlane.xlu2 %409  ;;  %v404_v55 = vpop.xlane.xlu0 %403 }
 0x10c   : > { %v442_v56 = vpop.xlane.xlu1 %441 }
 0x10d   : > { %v460_v6 = vmul.f32 0.0625, %v442_v56 }
 0x10f   : > { %v468_v15 = vsub.f32 %v410_v54, %v460_v6 }
 0x111   : > { %v489_v24 = vperm.slane %v468_v15, %v483_v5 }
 0x113   : > { %v448_v57 = vpop.xlane.xlu2 %447  ;;  %v436_v58 = vpop.xlane.xlu0 %435 }
 0x114   : > { %v454_v59 = vpop.xlane.xlu1 %453  ;;  %v458_v3 = vmul.f32 0.0625, %v436_v58  ;;  %v462_v13 = vmul.f32 0.0625, %v448_v57 }
 0x115   : > { %v464_v20 = vmul.f32 0.0625, %v454_v59 }
 0x116   : > { %v466_v8 = vsub.f32 %v404_v55, %v458_v3 }
 0x118   : > { %v484_v19 = vperm.slane %v466_v8, %v483_v5 }
 0x11b   : > { %v451_v60 = vpop.xlane.xlu2 %450  ;;  %v416_v61 = vpop.xlane.xlu0 %415 }
 0x11c   : > { %v407_v62 = vpop.xlane.xlu1 %406  ;;  %v463_v14 = vmul.f32 0.0625, %v451_v60  ;;  %v470_v23 = vsub.f32 %v416_v61, %v462_v13 }
 0x11e   : > { %v492_v32 = vperm.slane %v470_v23, %v483_v5 }
 0x123   : > { %v413_v63 = vpop.xlane.xlu0 %412  ;;  %v457_v1 = vpop.xlane.xlu2 %456 }
 0x124   : > { %v445_v0 = vpop.xlane.xlu1 %444  ;;  %v465_v25 = vmul.f32 0.0625, %v457_v1 }
 0x125   : > { %v461_v4 = vmul.f32 0.0625, %v445_v0 }
 0x127   : > { %v469_v10 = vsub.f32 %v413_v63, %v461_v4 }
 0x129   : > { %v490_v21 = vperm.slane %v469_v10, %v485_v9 }
 0x12b   : > { %v439_v7 = vpop.xlane.xlu0 %438  ;;  %v422_v17 = vpop.xlane.xlu2 %421  ;;  %v491_v30 = vsel %vm487_vm4, %v490_v21, %v489_v24 }
 0x12c   : > { %v459_v11 = vmul.f32 0.0625, %v439_v7  ;;  %v419_v12 = vpop.xlane.xlu1 %418  ;;  %v472_v26 = vsub.f32 %v422_v17, %v464_v20 }
 0x12d   : > { %v471_v18 = vsub.f32 %v419_v12, %v463_v14 }
 0x12e   : > { %v467_v16 = vsub.f32 %v407_v62, %v459_v11  ;;  %v495_v34 = vperm.slane %v472_v26, %v483_v5 }
 0x12f   : > { %v493_v28 = vperm.slane %v471_v18, %v485_v9 }
 0x130   : > { %v486_v22 = vperm.slane %v467_v16, %v485_v9 }
 0x131   : > { %v494_v36 = vsel %vm487_vm4, %v493_v28, %v492_v32 }
 0x132   : > { %v488_v27 = vsel %vm487_vm4, %v486_v22, %v484_v19 }
 0x133   : > { %v425_v29 = vpop.xlane.xlu0 %424  ;;  %v499_v33 = vsel %vm498_vm5, %v491_v30, %v488_v27 }
 0x134   : > { %v473_v31 = vsub.f32 %v425_v29, %v465_v25  ;;  %v501_v37 = vsel %vm500_vm6, %v494_v36, %v499_v33 }
 0x136   : > { %v496_v35 = vperm.slane %v473_v31, %v485_v9 }
 0x138   : > { %v497_v38 = vsel %vm487_vm4, %v496_v35, %v495_v34 }
 0x139   : > { %v503_v39 = vsel %vm502_vm7, %v497_v38, %v501_v37 }
 0x13a   : > { %506 = vst.msk [vmem:[%s246_s30] sm:$0xf] %vm505_vm8, %v503_v39 }
 0x13b PF: > { %s13_s14 = sadd.s32 1, %s717_s14   ;;  %s825_s12 = smov %s713_s13 }
 0x13c   : > { %p10_p5 = scmp.ge.s32.totalorder %s13_s14, 4   ;;  %s826_s13 = smov %s828_s15 }
 0x13e   :  { %12 = sbr.rel (!%p10_p5) target bundleno = 2 (0x2), region = 68 }

// kernel: prob_attention.3
= control target key start
LH: loop header
LB: loop body
LE: loop exit
PB: predicated region body
PF: predicated region fallthrough
CT: control target
= control target key end

     0   :  { %s944_s15 = smov 0   ;;  %s1044_s0 = inlined_call_operand.vmem [shape: f32[2,4,16,32], index: 0, kind: input, shape index: {}]   ;;  %s1045_s1 = inlined_call_operand.vmem [shape: bf16[2,4,16,32], index: 1, kind: input, shape index: {}]   ;;  %s1046_s2 = inlined_call_operand.vmem [shape: bf16[2,4,16,32], index: 2, kind: input, shape index: {}]   ;;  %s1047_s3 = inlined_call_operand.vmem [shape: s32[2,4,16], index: 3, kind: input, shape index: {}]   ;;  %s1048_s4 = inlined_call_operand.vmem [shape: f32[2,4,16,32], index: 4, kind: output, shape index: {}]  }
   0x1 LB: > { %s796_s16 = sadd.s32 4294967295, %s917_s15   ;;  %p800_p0 = scmp.ge.s32.totalorder %s917_s15, 1  ;;  %s917_s15 = sphi %s944_s15, %s14_s15  }
   0x2   : > { %p191_p1 = scmp.lt.s32.totalorder %s917_s15, 3 }
   0x4   : > { %p192_p2 = pnand %p800_p0, %p191_p1 }
   0x5   : > { %p231_p3 = scmp.lt.s32.totalorder (!%p192_p2), %s796_s16, 1 }
   0x6   : > { %195 = sbr.rel (%p192_p2) target bundleno = 447 (0x1bf), region = 36 }
   0xb   : > { %v418_v0 = vlaneseq  ;;  %s1050_s16 = smov (!%p231_p3, %s796_s16), 1  ;;  %vm307_vm0 = vcmask 261120   ;;  %vm488_vm1 = vcmask 130048  }
   0xc   : > { %s853_s17 = sshll.u32 %s1050_s16, 5  ;;  %s807_s18 = sshll.u32 %s1050_s16, 2 }
   0xd   : > { %v953_v1 = vshrl.u32 %v418_v0, 7  ;;  %s240_s21 = scalar_lea.vmem %s1045_s1, %s853_s17  ;;  %s249_s24 = scalar_lea.vmem %s1047_s3, %s807_s18  ;;  %v419_v53 = vand.u32 127, %v418_v0 }
   0xe   : > { %v856_v2 = vld [vmem:[%s240_s21] sm:$0xff]  ;;  %v858_v3 = vld [vmem:[%s240_s21 + $0x10] sm:$0xff]  ;;  %v859_v4 = vld [vmem:[%s240_s21 + $0x18] sm:$0xff]  ;;  %s852_s25 = sshll.u32 %s1050_s16, 6  ;;  %s245_s5 = scalar_lea.vmem %s1046_s2, %s853_s17 }
   0xf   : > { %874 = vset.pattern.permute.xlu1 %v953_v1  ;;  %872 = vset.pattern.permute.xlu0 %v953_v1  ;;  %v971_v5 = vld [vmem:[%s249_s24] sm:$0xf]  ;;  %v857_v6 = vld [vmem:[%s240_s21 + $0x8] sm:$0xff]  ;;  %s235_s28 = scalar_lea.vmem %s1044_s0, %s852_s25  ;;  %v312_v7 = vsel %vm307_vm0, %v856_v2, 0  ;;  %v372_v8 = vsel %vm307_vm0, %v858_v3, 0  ;;  %v402_v9 = vsel %vm307_vm0, %v859_v4, 0  ;;  %s1023_s8 = scalar_lea.vmem %s1048_s4, %s852_s25 }
  0x10   : > { %875 = vset.pattern.permute.xlu2 %v953_v1  ;;  %v459_v10 = vperm.slane %v971_v5, 3  ;;  %v256_v11 = vld [vmem:[%s235_s28] sm:$0xff]  ;;  %v257_v12 = vld [vmem:[%s235_s28 + $0x8] sm:$0xff]  ;;  %321 = vmatpush.bf16.xpose.msra.mxu0 %v312_v7  ;;  %v342_v13 = vsel %vm307_vm0, %v857_v6, 0  ;;  %v262_v19 = vld [vmem:[%s235_s28 + $0x30] sm:$0xff]  ;;  %v446_v21 = vperm.slane %v971_v5, 2 }
  0x11   : > { %381 = vmatpush.bf16.xpose.msra.mxu2 %v372_v8  ;;  %v281_v14 = vmul.f32 0.17677669, %v256_v11  ;;  %v282_v15 = vmul.f32 0.17677669, %v257_v12  ;;  %v260_v16 = vld [vmem:[%s235_s28 + $0x20] sm:$0xff]  ;;  %411 = vmatpush.bf16.xpose.msra.mxu3 %v402_v9  ;;  %v261_v17 = vld [vmem:[%s235_s28 + $0x28] sm:$0xff] }
  0x12   : > { %351 = vmatpush.bf16.xpose.msra.mxu1 %v342_v13  ;;  %v285_v18 = vmul.f32 0.17677669, %v260_v16  ;;  %v263_v20 = vld [vmem:[%s235_s28 + $0x38] sm:$0xff]  ;;  %v286_v24 = vmul.f32 0.17677669, %v261_v17  ;;  %v258_v26 = vld [vmem:[%s235_s28 + $0x10] sm:$0xff] }
  0x13   : > { %v289_v22 = vpack.c.bf16 %v281_v14, %v281_v14  ;;  %v290_v23 = vpack.c.bf16 %v282_v15, %v282_v15  ;;  %v287_v25 = vmul.f32 0.17677669, %v262_v19  ;;  %v259_v27 = vld [vmem:[%s235_s28 + $0x18] sm:$0xff]  ;;  %v288_v29 = vmul.f32 0.17677669, %v263_v20 }
  0x14   : > { %v293_v28 = vpack.c.bf16 %v285_v18, %v285_v18  ;;  %v283_v30 = vmul.f32 0.17677669, %v258_v26  ;;  %v284_v31 = vmul.f32 0.17677669, %v259_v27  ;;  %v294_v34 = vpack.c.bf16 %v286_v24, %v286_v24  ;;  %v860_v26 = vld [vmem:[%s245_s5] sm:$0xff]  ;;  %v861_v27 = vld [vmem:[%s245_s5 + $0x8] sm:$0xff] }
  0x15   : > { %v299_v32 = vunpack.c.l.b16 %v289_v22  ;;  %v300_v33 = vunpack.c.l.b16 %v290_v23  ;;  %v295_v35 = vpack.c.bf16 %v287_v25, %v287_v25  ;;  %v296_v37 = vpack.c.bf16 %v288_v29, %v288_v29  ;;  %v863_v22 = vld [vmem:[%s245_s5 + $0x18] sm:$0xff] }
  0x16   : > { %v360_v36 = vunpack.c.l.b16 %v293_v28  ;;  %v291_v38 = vpack.c.bf16 %v283_v30, %v283_v30  ;;  %v292_v39 = vpack.c.bf16 %v284_v31, %v284_v31  ;;  %v361_v41 = vunpack.c.l.b16 %v294_v34 }
  0x17   : > { %464 = vperm.xlu1 %874, %v459_v10   ;;  %451 = vperm.xlu0 %872, %v446_v21   ;;  %v301_v40 = vpack.c.b16 %v300_v33, %v299_v32  ;;  %v390_v42 = vunpack.c.l.b16 %v295_v35  ;;  %v420_v43 = vperm.slane %v971_v5, 0  ;;  %v391_v44 = vunpack.c.l.b16 %v296_v37 }
  0x18   : > { %v429_v45 = vadd.s32 8, %v953_v1  ;;  %v330_v46 = vunpack.c.l.b16 %v291_v38  ;;  %v331_v47 = vunpack.c.l.b16 %v292_v39  ;;  %v362_v48 = vpack.c.b16 %v361_v41, %v360_v36  ;;  %590 = vmatpush.bf16.msrb.mxu0 %v860_v26 }
  0x19   : > { %814 = vmatmul.msk.bf16.vlgmr.msra.gmra.mxu0 %vm307_vm0, %v301_v40  ;;  %425 = vperm.xlu2 %875, %v420_v43   ;;  %v392_v49 = vpack.c.b16 %v391_v44, %v390_v42  ;;  %v433_v51 = vperm.slane %v971_v5, 1 }
  0x1a   : > { %v332_v50 = vpack.c.b16 %v331_v47, %v330_v46  ;;  %824 = vmatmul.msk.bf16.vlgmr.msra.gmra.mxu2 %vm307_vm0, %v362_v48  ;;  %674 = vmatpush.bf16.msrb.mxu3 %v863_v22 }
  0x1b   : > { %829 = vmatmul.msk.bf16.vlgmr.msra.gmra.mxu3 %vm307_vm0, %v392_v49  ;;  %618 = vmatpush.bf16.msrb.mxu1 %v861_v27 }
  0x1c   : > { %819 = vmatmul.msk.bf16.vlgmr.msra.gmra.mxu1 %vm307_vm0, %v332_v50 }
  0x1f   : > { %876 = vset.pattern.permute.xlu1 %v429_v45  ;;  %873 = vset.pattern.permute.xlu0 %v429_v45 }
  0x21   : > { %878 = vset.pattern.permute.xlu2 %v429_v45 }
  0x27   : > { %470 = vperm.xlu1 %876, %v459_v10   ;;  %457 = vperm.xlu0 %873, %v446_v21   ;;  %v862_v21 = vld [vmem:[%s245_s5 + $0x10] sm:$0xff] }
  0x28   : > { %646 = vmatpush.bf16.msrb.mxu2 %v862_v21 }
  0x29   : > { %431 = vperm.xlu2 %878, %v420_v43  }
  0x2f   : > { %877 = vset.pattern.permute.xlu1 %v953_v1 }
  0x31   : > { %444 = vperm.xlu2 %878, %v433_v51  }
  0x37   : > { %438 = vperm.xlu1 %877, %v433_v51  }
  0x73   : > { %v426_v52 = vpop.permute.xlu2 %425 }
  0x74   : > { %vm472_vm2 = vcmp.gt.s32.totalorder %v419_v53, %v426_v52 }
  0x83   : > { %v432_v54 = vpop.permute.xlu2 %431 }
  0x84   : > { %vm473_vm8 = vcmp.gt.s32.totalorder %v419_v53, %v432_v54 }
  0x89   : > { %v465_v57 = vpop.permute.xlu1 %464  ;;  %v452_v59 = vpop.permute.xlu0 %451 }
  0x8a   : > { %vm476_vm3 = vcmp.gt.s32.totalorder %v419_v53, %v452_v59  ;;  %vm478_vm4 = vcmp.gt.s32.totalorder %v419_v53, %v465_v57 }
  0x8b   : > { %v445_v1 = vpop.permute.xlu2 %444 }
  0x8c   : > { %vm475_vm5 = vcmp.gt.s32.totalorder %v419_v53, %v445_v1 }
  0x96   : > { %v323_v55 = vpop.f32.mrf.mxu0 }
  0x97   : > { %v480_v56 = vsel %vm472_vm2, -inf, %v323_v55 }
  0x98   : > { %v489_v58 = vsel %vm488_vm1, %v480_v56, -inf }
  0x99   : > { %490 = vmax.xlane.f32.xlu0 %v489_v58  ;;  %v353_v60 = vpop.f32.mrf.mxu1  ;;  %v471_v2 = vpop.permute.xlu1 %470 }
  0x9a   : > { %v458_v5 = vpop.permute.xlu0 %457  ;;  %vm479_vm7 = vcmp.gt.s32.totalorder %v419_v53, %v471_v2 }
  0x9b   : > { %vm477_vm6 = vcmp.gt.s32.totalorder %v419_v53, %v458_v5 }
  0x9d   : > { %v383_v61 = vpop.f32.mrf.mxu2 }
  0x9e   : > { %v484_v62 = vsel %vm476_vm3, -inf, %v383_v61  ;;  %v413_v63 = vpop.f32.mrf.mxu3  ;;  %v325_v16 = vpop.f32.mrf.mxu0 }
  0x9f   : > { %v486_v3 = vsel %vm478_vm4, -inf, %v413_v63  ;;  %v501_v0 = vsel %vm488_vm1, %v484_v62, -inf  ;;  %v481_v17 = vsel %vm473_vm8, -inf, %v325_v16 }
  0xa0   : > { %v507_v4 = vsel %vm488_vm1, %v486_v3, -inf  ;;  %v492_v19 = vsel %vm488_vm1, %v481_v17, -inf }
  0xa1   : > { %502 = vmax.xlane.f32.xlu0 %v501_v0  ;;  %508 = vmax.xlane.f32.xlu2 %v507_v4  ;;  %v355_v6 = vpop.f32.mrf.mxu1 }
  0xa2   : > { %v483_v7 = vsel %vm475_vm5, -inf, %v355_v6 }
  0xa3   : > { %v498_v14 = vsel %vm488_vm1, %v483_v7, -inf }
  0xa5   : > { %v385_v8 = vpop.f32.mrf.mxu2 }
  0xa6   : > { %v485_v9 = vsel %vm477_vm6, -inf, %v385_v8  ;;  %v415_v10 = vpop.f32.mrf.mxu3 }
  0xa7   : > { %v487_v11 = vsel %vm479_vm7, -inf, %v415_v10  ;;  %v504_v13 = vsel %vm488_vm1, %v485_v9, -inf }
  0xa8   : > { %v510_v15 = vsel %vm488_vm1, %v487_v11, -inf  ;;  %505 = vmax.xlane.f32.xlu1 %v504_v13 }
  0xa9   : > { %v439_v12 = vpop.permute.xlu1 %438  ;;  %499 = vmax.xlane.f32.xlu0 %v498_v14  ;;  %511 = vmax.xlane.f32.xlu2 %v510_v15 }
  0xaa   : > { %vm474_vm9 = vcmp.gt.s32.totalorder %v419_v53, %v439_v12 }
  0xab   : > { %v482_v18 = vsel %vm474_vm9, -inf, %v353_v60 }
  0xac   : > { %v495_v20 = vsel %vm488_vm1, %v482_v18, -inf }
  0xb0   : > { %493 = vmax.xlane.f32.xlu1 %v492_v19 }
  0xb1   : > { %496 = vmax.xlane.f32.xlu2 %v495_v20 }
 0x10c   : > { %v491_v23 = vpop.xlane.xlu0 %490 }
 0x10d   : > { %v513_v24 = vsub.f32 %v480_v56, %v491_v23 }
 0x10f   : > { %v521_v25 = vmul.f32 1.442695, %v513_v24 }
 0x111   : > { %879 = vpow2.f32 %v521_v25 }
 0x114   : > { %v503_v28 = vpop.xlane.xlu0 %502  ;;  %v509_v29 = vpop.xlane.xlu2 %508 }
 0x115   : > { %v517_v30 = vsub.f32 %v484_v62, %v503_v28  ;;  %v519_v31 = vsub.f32 %v486_v3, %v509_v29 }
 0x117   : > { %v880_v32 = vpop.eup %879  ;;  %v529_v33 = vmul.f32 1.442695, %v517_v30  ;;  %v533_v35 = vmul.f32 1.442695, %v519_v31 }
 0x118   : > { %v537_v34 = vsel %vm488_vm1, %v880_v32, 0.0  ;;  %v561_v4 = vpack.c.bf16 %v880_v32, %v880_v32 }
 0x119   : > { %881 = vpow2.f32 %v529_v33  ;;  %538 = vadd.xlane.f32.xlu1 %v537_v34 }
 0x11a   : > { %883 = vpow2.f32 %v533_v35  ;;  %v571_v12 = vunpack.c.l.b16 %v561_v4 }
 0x11b   : > { %v506_v36 = vpop.xlane.xlu1 %505 }
 0x11c   : > { %v500_v37 = vpop.xlane.xlu0 %499  ;;  %v512_v38 = vpop.xlane.xlu2 %511  ;;  %v518_v39 = vsub.f32 %v485_v9, %v506_v36 }
 0x11d   : > { %v516_v40 = vsub.f32 %v483_v7, %v500_v37  ;;  %v520_v41 = vsub.f32 %v487_v11, %v512_v38 }
 0x11e   : > { %v531_v43 = vmul.f32 1.442695, %v518_v39 }
 0x11f   : > { %v882_v42 = vpop.eup %881  ;;  %v527_v44 = vmul.f32 1.442695, %v516_v40  ;;  %v535_v45 = vmul.f32 1.442695, %v520_v41 }
 0x120   : > { %v549_v46 = vsel %vm488_vm1, %v882_v42, 0.0  ;;  %885 = vpow2.f32 %v531_v43  ;;  %v884_v47 = vpop.eup %883  ;;  %v565_v51 = vpack.c.bf16 %v882_v42, %v882_v42 }
 0x121   : > { %550 = vadd.xlane.f32.xlu2 %v549_v46  ;;  %887 = vpow2.f32 %v535_v45  ;;  %v567_v54 = vpack.c.bf16 %v884_v47, %v884_v47  ;;  %v555_v14 = vsel %vm488_vm1, %v884_v47, 0.0 }
 0x122   : > { %889 = vpow2.f32 %v527_v44  ;;  %v627_v61 = vunpack.c.l.b16 %v565_v51 }
 0x123   : > { %v494_v48 = vpop.xlane.xlu1 %493  ;;  %v655_v1 = vunpack.c.l.b16 %v567_v54 }
 0x124   : > { %v497_v49 = vpop.xlane.xlu2 %496  ;;  %v514_v50 = vsub.f32 %v481_v17, %v494_v48 }
 0x125   : > { %v515_v52 = vsub.f32 %v482_v18, %v497_v49 }
 0x126   : > { %v886_v53 = vpop.eup %885  ;;  %v523_v55 = vmul.f32 1.442695, %v514_v50 }
 0x127   : > { %v888_v56 = vpop.eup %887  ;;  %v566_v57 = vpack.c.bf16 %v886_v53, %v886_v53  ;;  %v525_v58 = vmul.f32 1.442695, %v515_v52  ;;  %v552_v20 = vsel %vm488_vm1, %v886_v53, 0.0 }
 0x128   : > { %v890_v59 = vpop.eup %889  ;;  %v568_v60 = vpack.c.bf16 %v888_v56, %v888_v56  ;;  %891 = vpow2.f32 %v523_v55  ;;  %v558_v19 = vsel %vm488_vm1, %v888_v56, 0.0 }
 0x129   : > { %v628_v62 = vunpack.c.l.b16 %v566_v57  ;;  %893 = vpow2.f32 %v525_v58  ;;  %v546_v63 = vsel %vm488_vm1, %v890_v59, 0.0  ;;  %v564_v6 = vpack.c.bf16 %v890_v59, %v890_v59 }
 0x12a   : > { %v656_v2 = vunpack.c.l.b16 %v568_v60  ;;  %547 = vadd.xlane.f32.xlu1 %v546_v63 }
 0x12b   : > { %v629_v3 = vpack.c.b16 %v628_v62, %v627_v61  ;;  %v600_v15 = vunpack.c.l.b16 %v564_v6 }
 0x12c   : > { %v657_v0 = vpack.c.b16 %v656_v2, %v655_v1 }
 0x12d   : > { %844 = vmatmul.msk.bf16.vlgmr.msrb.gmra.mxu2 %vm488_vm1, %v629_v3 }
 0x12e   : > { %v892_v5 = vpop.eup %891  ;;  %849 = vmatmul.msk.bf16.vlgmr.msrb.gmra.mxu3 %vm488_vm1, %v657_v0 }
 0x12f   : > { %v894_v7 = vpop.eup %893  ;;  %v562_v8 = vpack.c.bf16 %v892_v5, %v892_v5  ;;  %v540_v9 = vsel %vm488_vm1, %v892_v5, 0.0 }
 0x130   : > { %v563_v10 = vpack.c.bf16 %v894_v7, %v894_v7  ;;  %v543_v11 = vsel %vm488_vm1, %v894_v7, 0.0  ;;  %541 = vadd.xlane.f32.xlu2 %v540_v9 }
 0x131   : > { %v572_v13 = vunpack.c.l.b16 %v562_v8  ;;  %544 = vadd.xlane.f32.xlu0 %v543_v11 }
 0x132   : > { %v599_v16 = vunpack.c.l.b16 %v563_v10  ;;  %556 = vadd.xlane.f32.xlu1 %v555_v14 }
 0x133   : > { %v573_v17 = vpack.c.b16 %v572_v13, %v571_v12 }
 0x134   : > { %v601_v18 = vpack.c.b16 %v600_v15, %v599_v16 }
 0x135   : > { %834 = vmatmul.msk.bf16.vlgmr.msrb.gmra.mxu0 %vm488_vm1, %v573_v17 }
 0x136   : > { %839 = vmatmul.msk.bf16.vlgmr.msrb.gmra.mxu1 %vm488_vm1, %v601_v18 }
 0x138   : > { %559 = vadd.xlane.f32.xlu2 %v558_v19 }
 0x139   : > { %553 = vadd.xlane.f32.xlu0 %v552_v20 }
 0x18c   : > { %v539_v21 = vpop.xlane.xlu1 %538 }
 0x194   : > { %v551_v22 = vpop.xlane.xlu2 %550 }
 0x195   : > { %895 = vrcp.f32 %v551_v22 }
 0x19b   : > { %v896_v28 = vpop.eup %895 }
 0x19d   : > { %v548_v23 = vpop.xlane.xlu1 %547 }
 0x1a3   : > { %v542_v25 = vpop.xlane.xlu2 %541 }
 0x1a4   : > { %v545_v24 = vpop.xlane.xlu0 %544 }
 0x1a5   : > { %v557_v26 = vpop.xlane.xlu1 %556 }
 0x1a6   : > { %897 = vrcp.f32 %v557_v26 }
 0x1a7   : > { %899 = vrcp.f32 %v539_v21 }
 0x1a8   : > { %901 = vrcp.f32 %v545_v24 }
 0x1ab   : > { %v560_v29 = vpop.xlane.xlu2 %559 }
 0x1ac   : > { %v554_v27 = vpop.xlane.xlu0 %553  ;;  %v898_v31 = vpop.eup %897 }
 0x1ad   : > { %v900_v34 = vpop.eup %899  ;;  %903 = vrcp.f32 %v554_v27 }
 0x1ae   : > { %v902_v37 = vpop.eup %901  ;;  %905 = vrcp.f32 %v560_v29 }
 0x1af   : > { %907 = vrcp.f32 %v542_v25 }
 0x1b0   : > { %v648_v30 = vpop.f32.mrf.mxu2  ;;  %909 = vrcp.f32 %v548_v23 }
 0x1b1   : > { %v693_v32 = vmul.f32 %v896_v28, %v648_v30  ;;  %v676_v33 = vpop.f32.mrf.mxu3 }
 0x1b2   : > { %v695_v35 = vmul.f32 %v898_v31, %v676_v33  ;;  %v592_v36 = vpop.f32.mrf.mxu0 }
 0x1b3   : > { %701 = vst.msk [vmem:[%s1023_s8 + $0x20] sm:$0xff] %vm307_vm0, %v693_v32  ;;  %v689_v38 = vmul.f32 %v900_v34, %v592_v36  ;;  %v620_v39 = vpop.f32.mrf.mxu1  ;;  %v904_v41 = vpop.eup %903 }
 0x1b4   : > { %703 = vst.msk [vmem:[%s1023_s8 + $0x30] sm:$0xff] %vm307_vm0, %v695_v35  ;;  %v691_v40 = vmul.f32 %v902_v37, %v620_v39  ;;  %v906_v43 = vpop.eup %905 }
 0x1b5   : > { %697 = vst.msk [vmem:[%s1023_s8] sm:$0xff] %vm307_vm0, %v689_v38  ;;  %v908_v46 = vpop.eup %907 }
 0x1b6   : > { %699 = vst.msk [vmem:[%s1023_s8 + $0x10] sm:$0xff] %vm307_vm0, %v691_v40  ;;  %v910_v49 = vpop.eup %909 }
 0x1b8   : > { %v650_v42 = vpop.f32.mrf.mxu2 }
 0x1b9   : > { %v694_v44 = vmul.f32 %v904_v41, %v650_v42  ;;  %v678_v45 = vpop.f32.mrf.mxu3 }
 0x1ba   : > { %v696_v47 = vmul.f32 %v906_v43, %v678_v45  ;;  %v594_v48 = vpop.f32.mrf.mxu0 }
 0x1bb   : > { %702 = vst.msk [vmem:[%s1023_s8 + $0x28] sm:$0xff] %vm307_vm0, %v694_v44  ;;  %v690_v50 = vmul.f32 %v908_v46, %v594_v48  ;;  %v622_v51 = vpop.f32.mrf.mxu1 }
 0x1bc   : > { %704 = vst.msk [vmem:[%s1023_s8 + $0x38] sm:$0xff] %vm307_vm0, %v696_v47  ;;  %v692_v52 = vmul.f32 %v910_v49, %v622_v51 }
 0x1bd   : > { %698 = vst.msk [vmem:[%s1023_s8 + $0x8] sm:$0xff] %vm307_vm0, %v690_v50 }
 0x1be   : > { %700 = vst.msk [vmem:[%s1023_s8 + $0x18] sm:$0xff] %vm307_vm0, %v692_v52 }
 0x1bf PF: > { %s14_s15 = sadd.s32 1, %s917_s15  }
 0x1c0   : > { %p11_p4 = scmp.ge.s32.totalorder %s14_s15, 4  }
 0x1c2   :  { %13 = sbr.rel (!%p11_p4) target bundleno = 1 (0x1), region = 75 }

</bundles_post_ra>
